<compile_context>
chip_gen: v6e
topology: v6e:2x2x1
jax: 0.10.0
libtpu: 0.0.40
codegen_flags: <defaults>
</compile_context>

<pallas_src>
import functools

import jax
import jax.numpy as jnp
from jax.experimental import pallas as pl
from jax.experimental.pallas import tpu as pltpu


def _round_up(x: int, m: int) -> int:
    return ((x + m - 1) // m) * m


def dsc_loss_kernel(logits_ref, targets_ref, out_ref, acc_ref, *,
                    alpha, smooth, n_rows, tile_n, tiles_per_shard):
    # logits_ref : (tile_n, C) VMEM (input dtype; upcast to f32 in-kernel)
    # targets_ref: (tile_n, 1) int32 VMEM
    # out_ref    : (1, 1) f32 SMEM -- per-shard partial of the mean loss
    # acc_ref    : (1,)   f32 SMEM -- running sum across the tile axis
    s = pl.program_id(0)          # shard axis (parallel)
    t = pl.program_id(1)          # tile-within-shard axis (arbitrary / reduce)

    @pl.when(t == 0)
    def _():
        acc_ref[0] = jnp.float32(0.0)

    x = logits_ref[...].astype(jnp.float32)                    # (tile_n, C)

    # Numerically-stable softmax pieces, fused into a single pass over the
    # tile: e is computed once, both reductions read it.  The full
    # probability matrix is never materialized -- only (tile_n, 1) columns.
    m = jnp.max(x, axis=-1, keepdims=True)                     # (tile_n, 1)
    e = jnp.exp(x - m)                                         # (tile_n, C)
    e_sum = jnp.sum(e, axis=-1, keepdims=True)                 # (tile_n, 1)

    # gather(softmax numerator) via one-hot select + lane reduction.
    # Note: out-of-range targets silently yield e_t = 0 (finite loss) rather
    # than raising like torch.gather would.
    col = jax.lax.broadcasted_iota(jnp.int32, x.shape, 1)
    e_t = jnp.sum(jnp.where(col == targets_ref[...], e, 0.0),
                  axis=-1, keepdims=True)                      # (tile_n, 1)

    # p = softmax(x)[target]; reciprocal only touches a column -> approx EUP.
    # Clamp to <= 1 so approx-reciprocal overshoot cannot NaN log1p(-p).
    p = jnp.minimum(e_t * pl.reciprocal(e_sum, approx=True), 1.0)

    if alpha == 1.0:
        pwf = (1.0 - p) * p
    else:
        # (1 - p) ** alpha via log1p for precision as p -> 1
        pwf = jnp.exp(alpha * jnp.log1p(-p)) * p

    loss = 1.0 - (2.0 * pwf + smooth) / (pwf + 1.0 + smooth)   # (tile_n, 1)

    # Mask rows past the true batch size (partial edge blocks read
    # unspecified data; per-row NaN/Inf cannot leak because jnp.where
    # selects 0.0 before the reduction).
    row = jax.lax.broadcasted_iota(jnp.int32, loss.shape, 0)
    global_row = (s * tiles_per_shard + t) * tile_n + row
    loss = jnp.where(global_row < n_rows, loss, 0.0)

    acc_ref[0] += jnp.sum(loss)

    @pl.when(t == tiles_per_shard - 1)
    def _():
        out_ref[0, 0] = acc_ref[0] / jnp.float32(n_rows)


def _choose_tile_n(n: int, c: int, itemsize: int, num_shards: int) -> int:
    # Byte-based target: ~2 MiB per logits tile in the *input* dtype.
    # With double-buffered inputs plus the f32 intermediates (upcast, exp,
    # one-hot select, iota) the live VMEM stays well under the 32 MiB scoped
    # limit set below on every generation (incl. v7x's 64 MiB physical).
    budget = 2 * 1024 * 1024
    align = 16 if itemsize == 2 else 8        # bf16 packs rows in pairs
    rows = budget // max(1, c * itemsize)
    rows = max(align, min(rows, 32768))
    rows = (rows // align) * align
    rows_needed = _round_up(max(1, pl.cdiv(n, num_shards)), 8)
    return max(8, min(rows, rows_needed))


def dsc_loss(logits, targets, alpha: float = 1.0, smooth: float = 1.0,
             *, num_shards: int = 1):
    """Pallas implementation of DSCLoss.forward (reduction='mean')."""
    n, c = logits.shape
    itemsize = jnp.dtype(logits.dtype).itemsize
    tile_n = _choose_tile_n(n, c, itemsize, num_shards)
    tiles_per_shard = max(1, pl.cdiv(pl.cdiv(n, num_shards), tile_n))
    padded_n = num_shards * tiles_per_shard * tile_n

    # Only the tiny targets array is padded (n*4 bytes) for deterministic
    # edge blocks; logits stay un-padded (no extra HBM read+write pass).
    targets_2d = targets.astype(jnp.int32).reshape(n, 1)
    if padded_n != n:
        targets_2d = jnp.pad(targets_2d, ((0, padded_n - n), (0, 0)))

    kernel = functools.partial(
        dsc_loss_kernel, alpha=float(alpha), smooth=float(smooth), n_rows=n,
        tile_n=tile_n, tiles_per_shard=tiles_per_shard)

    # Advisory cost estimate so XLA schedules/overlaps the call sensibly.
    cost = pl.CostEstimate(
        flops=7 * n * c,                  # max/sub/select/sum etc. per element
        transcendentals=n * c + 4 * n,    # exp over tiles + recip/log1p/exp cols
        bytes_accessed=n * c * itemsize + padded_n * 4 + num_shards * 4,
    )

    partials = pl.pallas_call(
        kernel,
        out_shape=jax.ShapeDtypeStruct((num_shards, 1), jnp.float32),
        grid=(num_shards, tiles_per_shard),
        in_specs=[
            pl.BlockSpec((tile_n, c),
                         lambda s, t: (s * tiles_per_shard + t, 0)),
            pl.BlockSpec((tile_n, 1),
                         lambda s, t: (s * tiles_per_shard + t, 0)),
        ],
        out_specs=pl.BlockSpec((1, 1), lambda s, t: (s, 0),
                               memory_space=pltpu.MemorySpace.SMEM),
        scratch_shapes=[pltpu.SMEM((1,), jnp.float32)],
        compiler_params=pltpu.CompilerParams(
            dimension_semantics=("parallel", "arbitrary"),
            vmem_limit_bytes=32 * 1024 * 1024),
        cost_estimate=cost,
    )(logits, targets_2d)

    # Tiny (num_shards,) reduction; each partial is already divided by n.
    return jnp.sum(partials)


def dsc_loss_ref(logits, targets, alpha: float = 1.0, smooth: float = 1.0):
    """Pure-JAX reference mirroring the PyTorch module."""
    probs = jax.nn.softmax(logits.astype(jnp.float32), axis=1)
    p = jnp.take_along_axis(probs, targets[:, None].astype(jnp.int32), axis=1)
    pwf = (1.0 - p) ** alpha * p
    loss = 1.0 - (2.0 * pwf + smooth) / (pwf + 1.0 + smooth)
    return jnp.mean(loss)


if __name__ == "__main__":
    key = jax.random.PRNGKey(0)
    k1, k2, k3, k4 = jax.random.split(key, 4)

    # Aligned batch of 8 samples, 32 classes.
    N, C = 8, 32
    logits = jax.random.normal(k1, (N, C), dtype=jnp.float32)
    targets = jax.random.randint(k2, (N,), 0, C, dtype=jnp.int32)

    # alpha = 1 (fast path)
    out = jax.block_until_ready(dsc_loss(logits, targets, alpha=1.0, smooth=1.0))
    ref = dsc_loss_ref(logits, targets, alpha=1.0, smooth=1.0)
    # approx=True (EUP) reciprocal carries up to ~1e-4 relative error on p.
    assert jnp.allclose(out, ref, atol=1e-3, rtol=1e-3), (out, ref)

    # general alpha path (exercises the clamped log1p branch)
    out2 = jax.block_until_ready(dsc_loss(logits, targets, alpha=2.0, smooth=1.0))
    ref2 = dsc_loss_ref(logits, targets, alpha=2.0, smooth=1.0)
    assert jnp.allclose(out2, ref2, atol=1e-3, rtol=1e-3), (out2, ref2)

    # Ragged batch: partial edge block, logits never padded, masked in-kernel.
    Nr = 13
    logits_r = jax.random.normal(k3, (Nr, C), dtype=jnp.float32)
    targets_r = jax.random.randint(k4, (Nr,), 0, C, dtype=jnp.int32)
    out3 = jax.block_until_ready(dsc_loss(logits_r, targets_r, alpha=2.0, smooth=1.0))
    ref3 = dsc_loss_ref(logits_r, targets_r, alpha=2.0, smooth=1.0)
    assert jnp.allclose(out3, ref3, atol=1e-3, rtol=1e-3), (out3, ref3)

    # Two-shard partial-reduction path (per-shard SMEM partials; serial loop
    # on single-TC chips, candidate for CORE_PARALLEL on v7x).
    out4 = jax.block_until_ready(
        dsc_loss(logits_r, targets_r, alpha=1.0, smooth=1.0, num_shards=2))
    ref4 = dsc_loss_ref(logits_r, targets_r, alpha=1.0, smooth=1.0)
    assert jnp.allclose(out4, ref4, atol=1e-3, rtol=1e-3), (out4, ref4)

    print("KERNEL_OK")
</pallas_src>

<mosaic_0001>
module attributes {stable_mosaic.version = 11 : i64} {
  func.func @dsc_loss_kernel(%arg0: i32, %arg1: i32, %arg2: memref<8x32xf32, #tpu.memory_space<vmem>>, %arg3: memref<8x1xi32, #tpu.memory_space<vmem>>, %arg4: memref<1x1xf32, #tpu.memory_space<smem>>, %arg5: memref<1xf32, #tpu.memory_space<smem>>) attributes {dimension_semantics = [#tpu.dimension_semantics<parallel>, #tpu.dimension_semantics<arbitrary>], iteration_bounds = array<i64: 1, 1>, scalar_prefetch = 0 : i64, scratch_operands = 1 : i64, tpu.core_type = #tpu.core_type<tc>, window_params = [{transform_indices = @transform_0, window_bounds = array<i64: 8, 32>}, {transform_indices = @transform_1, window_bounds = array<i64: 8, 1>}, {transform_indices = @transform_2, window_bounds = array<i64: 1, 1>}]} {
    %c0_i32 = arith.constant 0 : i32
    %0 = arith.cmpi eq, %arg1, %c0_i32 : i32
    %1 = arith.extui %0 : i1 to i32
    %c0_i32_0 = arith.constant 0 : i32
    %2 = arith.cmpi ne, %1, %c0_i32_0 : i32
    scf.if %2 {
      %cst_21 = arith.constant 0.000000e+00 : f32
      %c0_22 = arith.constant 0 : index
      %57 = memref.load %arg5[%c0_22] : memref<1xf32, #tpu.memory_space<smem>>
      memref.store %cst_21, %arg5[%c0_22] : memref<1xf32, #tpu.memory_space<smem>>
    } else {
    }
    %c0 = arith.constant 0 : index
    %c0_1 = arith.constant 0 : index
    %3 = vector.load %arg2[%c0, %c0_1] : memref<8x32xf32, #tpu.memory_space<vmem>>, vector<8x32xf32>
    %cst = arith.constant dense<0xFF800000> : vector<8xf32>
    %4 = vector.multi_reduction <maximumf>, %3, %cst [1] : vector<8x32xf32> to vector<8xf32>
    %5 = vector.shape_cast %4 : vector<8xf32> to vector<8x1xf32>
    %6 = vector.broadcast %5 : vector<8x1xf32> to vector<8x32xf32>
    %7 = arith.subf %3, %6 : vector<8x32xf32>
    %8 = math.exp %7 : vector<8x32xf32>
    %cst_2 = arith.constant dense<0.000000e+00> : vector<8xf32>
    %9 = vector.multi_reduction <add>, %8, %cst_2 [1] : vector<8x32xf32> to vector<8xf32>
    %10 = vector.shape_cast %9 : vector<8xf32> to vector<8x1xf32>
    %11 = tpu.iota {dimensions = array<i32: 1>} : vector<8x32xi32>
    %c0_3 = arith.constant 0 : index
    %c0_4 = arith.constant 0 : index
    %12 = vector.load %arg3[%c0_3, %c0_4] : memref<8x1xi32, #tpu.memory_space<vmem>>, vector<8x1xi32>
    %13 = vector.broadcast %12 : vector<8x1xi32> to vector<8x32xi32>
    %14 = arith.cmpi eq, %11, %13 : vector<8x32xi32>
    %cst_5 = arith.constant 0.000000e+00 : f32
    %15 = vector.broadcast %cst_5 : f32 to vector<8x32xf32>
    %16 = arith.select %14, %8, %15 : vector<8x32xi1>, vector<8x32xf32>
    %cst_6 = arith.constant dense<0.000000e+00> : vector<8xf32>
    %17 = vector.multi_reduction <add>, %16, %cst_6 [1] : vector<8x32xf32> to vector<8xf32>
    %18 = vector.shape_cast %17 : vector<8xf32> to vector<8x1xf32>
    %19 = tpu.reciprocal %10 {approx = true} : vector<8x1xf32> -> vector<8x1xf32>
    %20 = arith.mulf %18, %19 : vector<8x1xf32>
    %cst_7 = arith.constant 1.000000e+00 : f32
    %21 = vector.broadcast %cst_7 : f32 to vector<8x1xf32>
    %22 = arith.minimumf %20, %21 : vector<8x1xf32>
    %cst_8 = arith.constant 1.000000e+00 : f32
    %23 = vector.broadcast %cst_8 : f32 to vector<8x1xf32>
    %24 = arith.subf %23, %22 : vector<8x1xf32>
    %25 = arith.mulf %24, %22 : vector<8x1xf32>
    %cst_9 = arith.constant 2.000000e+00 : f32
    %26 = vector.broadcast %cst_9 : f32 to vector<8x1xf32>
    %27 = arith.mulf %26, %25 : vector<8x1xf32>
    %cst_10 = arith.constant 1.000000e+00 : f32
    %28 = vector.broadcast %cst_10 : f32 to vector<8x1xf32>
    %29 = arith.addf %27, %28 : vector<8x1xf32>
    %cst_11 = arith.constant 1.000000e+00 : f32
    %30 = vector.broadcast %cst_11 : f32 to vector<8x1xf32>
    %31 = arith.addf %25, %30 : vector<8x1xf32>
    %cst_12 = arith.constant 1.000000e+00 : f32
    %32 = vector.broadcast %cst_12 : f32 to vector<8x1xf32>
    %33 = arith.addf %31, %32 : vector<8x1xf32>
    %34 = arith.divf %29, %33 : vector<8x1xf32>
    %cst_13 = arith.constant 1.000000e+00 : f32
    %35 = vector.broadcast %cst_13 : f32 to vector<8x1xf32>
    %36 = arith.subf %35, %34 : vector<8x1xf32>
    %37 = tpu.iota {dimensions = array<i32: 0>} : vector<8x1xi32>
    %c1_i32 = arith.constant 1 : i32
    %38 = arith.muli %arg0, %c1_i32 : i32
    %39 = arith.addi %38, %arg1 : i32
    %c8_i32 = arith.constant 8 : i32
    %40 = arith.muli %39, %c8_i32 : i32
    %41 = vector.broadcast %40 : i32 to vector<8x1xi32>
    %42 = arith.addi %41, %37 : vector<8x1xi32>
    %c8_i32_14 = arith.constant 8 : i32
    %43 = vector.broadcast %c8_i32_14 : i32 to vector<8x1xi32>
    %44 = arith.cmpi slt, %42, %43 : vector<8x1xi32>
    %cst_15 = arith.constant 0.000000e+00 : f32
    %45 = vector.broadcast %cst_15 : f32 to vector<8x1xf32>
    %46 = arith.select %44, %36, %45 : vector<8x1xi1>, vector<8x1xf32>
    %c0_16 = arith.constant 0 : index
    %47 = memref.load %arg5[%c0_16] : memref<1xf32, #tpu.memory_space<smem>>
    %48 = vector.shape_cast %46 : vector<8x1xf32> to vector<1x8x1xf32>
    %cst_17 = arith.constant dense<0.000000e+00> : vector<1xf32>
    %49 = vector.multi_reduction <add>, %48, %cst_17 [1, 2] : vector<1x8x1xf32> to vector<1xf32>
    %50 = vector.shape_cast %49 : vector<1xf32> to vector<1x1x1xf32>
    %51 = vector.extract %50[0, 0, 0] : f32 from vector<1x1x1xf32>
    %52 = arith.addf %47, %51 : f32
    %c0_18 = arith.constant 0 : index
    %53 = memref.load %arg5[%c0_18] : memref<1xf32, #tpu.memory_space<smem>>
    memref.store %52, %arg5[%c0_18] : memref<1xf32, #tpu.memory_space<smem>>
    %c0_i32_19 = arith.constant 0 : i32
    %54 = arith.cmpi eq, %arg1, %c0_i32_19 : i32
    %55 = arith.extui %54 : i1 to i32
    %c0_i32_20 = arith.constant 0 : i32
    %56 = arith.cmpi ne, %55, %c0_i32_20 : i32
    scf.if %56 {
      %c0_21 = arith.constant 0 : index
      %57 = memref.load %arg5[%c0_21] : memref<1xf32, #tpu.memory_space<smem>>
      %cst_22 = arith.constant 8.000000e+00 : f32
      %58 = arith.divf %57, %cst_22 : f32
      %c0_23 = arith.constant 0 : index
      %c0_24 = arith.constant 0 : index
      %59 = memref.load %arg4[%c0_23, %c0_24] : memref<1x1xf32, #tpu.memory_space<smem>>
      memref.store %58, %arg4[%c0_23, %c0_24] : memref<1x1xf32, #tpu.memory_space<smem>>
    } else {
    }
    return
  }
  func.func @transform_0(%arg0: i32, %arg1: i32) -> (i32, i32) {
    %c1_i32 = arith.constant 1 : i32
    %0 = arith.muli %arg0, %c1_i32 : i32
    %1 = arith.addi %0, %arg1 : i32
    %c0_i32 = arith.constant 0 : i32
    %c0_i32_0 = arith.constant 0 : i32
    return %1, %c0_i32 : i32, i32
  }
  func.func @transform_1(%arg0: i32, %arg1: i32) -> (i32, i32) {
    %c1_i32 = arith.constant 1 : i32
    %0 = arith.muli %arg0, %c1_i32 : i32
    %1 = arith.addi %0, %arg1 : i32
    %c0_i32 = arith.constant 0 : i32
    %c0_i32_0 = arith.constant 0 : i32
    return %1, %c0_i32 : i32, i32
  }
  func.func @transform_2(%arg0: i32, %arg1: i32) -> (i32, i32) {
    %c0_i32 = arith.constant 0 : i32
    %c0_i32_0 = arith.constant 0 : i32
    return %arg0, %c0_i32 : i32, i32
  }
}

</mosaic_0001>

<bundles_post_ra>
// kernel: tpu_custom_call.1
= control target key start
LH: loop header
LB: loop body
LE: loop exit
PB: predicated region body
PF: predicated region fallthrough
CT: control target
= control target key end

     0   :  { %vm53_vm0 = vcmask 261120   ;;  %s193_s0 = inlined_call_operand.vmem [shape: f32[8,32], index: 0, kind: input, shape index: {}]   ;;  %s194_s1 = inlined_call_operand.vmem [shape: s32[8,1], index: 1, kind: input, shape index: {}]   ;;  %s195_s2 = inlined_call_operand.hbm [shape: f32[1,1], index: 2, kind: output, shape index: {}]  }
   0x1   :  { %v52_v0 = vld [vmem:[%s193_s0] sm:$0xff] }
   0x2   :  { %7 = vsyncpa [#allocation4], 0  ;;  %v54_v1 = vsel %vm53_vm0, %v52_v0, -inf  ;;  %v164_v2 = vmov 0   ;;  %v65_v3 = vld [vmem:[%s194_s1] sm:$0xff]  ;;  %v63_v7 = vlaneseq  ;;  %vm95_vm2 = vcmask 7168  }
   0x3   :  { %147 = vset.pattern.permute.xlu0 %v164_v2  ;;  %s165_s13 = smov [#allocation3]  }
   0x4   :  { %55 = vmax.xlane.f32.xlu0 %v54_v1  ;;  %v64_v8 = vand.u32 127, %v63_v7 }
  0x1a   :  { %67 = vperm.xlu0 %147, %v65_v3  }
  0x8d   :  { %v56_v4 = vpop.xlane.xlu0 %55 }
  0x8e   :  { %v57_v5 = vsub.f32 %v52_v0, %v56_v4 }
  0x90   :  { %v58_v6 = vmul.f32 1.442695, %v57_v5 }
  0x92   :  { %148 = vpow2.f32 %v58_v6 }
  0x95   :  { %v68_v9 = vpop.permute.xlu0 %67 }
  0x96   :  { %vm69_vm1 = vcmp.eq.s32.totalorder %v64_v8, %v68_v9 }
  0x9f   :  { %v149_v10 = vpop.eup %148 }
  0xa0   :  { %v60_v11 = vsel %vm53_vm0, %v149_v10, 0.0  ;;  %v70_v12 = vsel %vm69_vm1, %v149_v10, 0.0 }
  0xa1   :  { %61 = vadd.xlane.f32.xlu1 %v60_v11  ;;  %v71_v13 = vsel %vm53_vm0, %v70_v12, 0.0 }
  0xa5   :  { %72 = vadd.xlane.f32.xlu1 %v71_v13 }
 0x12a   :  { %v62_v14 = vpop.xlane.xlu1 %61 }
 0x12b   :  { %150 = vrcp.f32 %v62_v14 }
 0x12e   :  { %v73_v16 = vpop.xlane.xlu1 %72 }
 0x138   :  { %v151_v15 = vpop.eup %150 }
 0x139   :  { %v75_v17 = vmul.f32 %v151_v15, %v73_v16 }
 0x13b   :  { %v76_v18 = vmin.f32 %v75_v17, 1.0 }
 0x13d   :  { %v77_v19 = vsub.f32 1.0, %v76_v18 }
 0x13f   :  { %v78_v20 = vmul.f32 %v77_v19, %v76_v18 }
 0x141   :  { %v81_v21 = vadd.f32 1.0, %v78_v20  ;;  %v79_v23 = vmul.f32 2.0, %v78_v20 }
 0x143   :  { %v82_v22 = vadd.f32 1.0, %v81_v21  ;;  %v80_v24 = vadd.f32 1.0, %v79_v23 }
 0x145   :  { %152 = vrcp.f32 %v82_v22 }
 0x152   :  { %v153_v25 = vpop.eup %152 }
 0x153   :  { %v84_v26 = vmul.f32 %v153_v25, %v80_v24 }
 0x155   :  { %v85_v27 = vsub.f32 1.0, %v84_v26 }
 0x157   :  { %v96_v28 = vsel %vm95_vm2, %v85_v27, 0.0 }
 0x158   :  { %97 = vadd.xlane.f32.xlu1 %v96_v28 }
 0x1e1   :  { %v98_v29 = vpop.xlane.xlu1 %97 }
 0x1e2   :  { %v99_v30 = vrot.slane %v98_v29, 4 }
 0x1e4   :  { %v100_v31 = vadd.f32 %v99_v30, %v98_v29 }
 0x1e6   :  { %v101_v32 = vrot.slane %v100_v31, 2 }
 0x1e8   :  { %v102_v33 = vadd.f32 %v101_v32, %v100_v31 }
 0x1ea   :  { %v103_v34 = vrot.slane %v102_v33, 1 }
 0x1ec   :  { %v104_v35 = vadd.f32 %v103_v34, %v102_v33 }
 0x1ee   :  { %143 = vpush %v104_v35 }
 0x21f   :  { %s144_s0 = spop %143 }
 0x220   :  { %s115_s1 = smul.f32 0.125, %s144_s0 }
 0x222   :  { %117 = sst [smem:[#allocation3]] %s115_s1 }
 0x223   :  { %125 = dma.smem_to_hbm %s165_s13, 16, %s195_s2, [#allocation4]  }
 0x224   :  { %162 = dma.done.wait [#allocation4], 16  }
 0x225   :  { %163 = vsyncadd [#allocation4], 4294967280 }
 0x226   :  { %129 = sfence }
 0x227   :  { %130 = vsyncpa [#allocation4], 1 }

</bundles_post_ra>
